<compile_context>
chip_gen: v7x
topology: tpu7x:2x2x1
jax: 0.10.0
libtpu: 0.0.40
codegen_flags: <defaults>
</compile_context>

<pallas_src>
import functools

import jax
import jax.numpy as jnp
from jax.experimental import pallas as pl
from jax.experimental.pallas import tpu as pltpu

LANES = 128
DEFAULT_TILE_ROWS = 4096  # (4096,128) f32 = 2 MiB/buffer


def _partial_sums_jax(x, t):
    """Plain-JAX partial sums [sum(bce), sum(p*t), sum(p), sum(t)] for tiny tails."""
    x = x.astype(jnp.float32)
    t = t.astype(jnp.float32)
    e = jnp.exp(-jnp.abs(x))
    bce = jnp.maximum(x, 0.0) - x * t + jnp.log1p(e)
    p = jax.nn.sigmoid(x)
    return jnp.stack([jnp.sum(bce), jnp.sum(p * t), jnp.sum(p), jnp.sum(t)])


def _bce_dice_partial_kernel(x_ref, t_ref, o_ref, *, rows_valid, tile_r,
                             tiles_per_core):
    """Accumulate per-lane partial sums for one (tile_r, 128) tile.

    o_ref : VMEM [32, 128] f32 per-core accumulator block:
        rows  0: 8 -> sum(bce)   rows  8:16 -> sum(p*t)
        rows 16:24 -> sum(p)     rows 24:32 -> sum(t)
    """
    c = pl.program_id(0)      # core (parallel) axis
    ti = pl.program_id(1)     # row-tile (reduction) axis
    block_idx = c * tiles_per_core + ti

    @pl.when(ti == 0)
    def _init():
        o_ref[...] = jnp.zeros_like(o_ref)

    # Cast on the loaded tile (inputs may be streamed as bf16/f16 to save HBM bytes).
    x = x_ref[...].astype(jnp.float32)
    t = t_ref[...].astype(jnp.float32)

    def compute(xv, tv):
        # exp(-|x|) reused for both the numerically-stable BCE and the sigmoid.
        e = jnp.exp(-jnp.abs(xv))
        bce = jnp.maximum(xv, 0.0) - xv * tv + jnp.log1p(e)
        inv = 1.0 / (1.0 + e)
        p = jnp.where(xv >= 0.0, inv, e * inv)       # sigmoid(xv)
        return bce, p

    def accumulate(bce, p, tv):
        groups = tile_r // 8
        # Pure full-vreg adds: (tile_r,128) -> (tile_r/8, 8, 128), sum over axis 0.
        o_ref[0:8, :] += jnp.sum(bce.reshape(groups, 8, LANES), axis=0)
        o_ref[8:16, :] += jnp.sum((p * tv).reshape(groups, 8, LANES), axis=0)
        o_ref[16:24, :] += jnp.sum(p.reshape(groups, 8, LANES), axis=0)
        o_ref[24:32, :] += jnp.sum(tv.reshape(groups, 8, LANES), axis=0)

    # Interior tiles (all rows valid) take the unmasked fast path.  Only the
    # ragged last tile and duplicate (clamped) tiles pay for the mask.
    n_full_tiles = rows_valid // tile_r
    needs_mask = block_idx >= n_full_tiles

    @pl.when(jnp.logical_not(needs_mask))
    def _fast():
        bce, p = compute(x, t)
        accumulate(bce, p, t)

    @pl.when(needs_mask)
    def _masked():
        rows_remaining = rows_valid - block_idx * tile_r   # <= 0 for duplicate tiles
        row_ids = jax.lax.broadcasted_iota(jnp.int32, (tile_r, LANES), 0)
        valid = row_ids < rows_remaining
        bce, p = compute(x, t)
        # Select (not multiply) so undefined out-of-bounds data cannot poison sums.
        accumulate(jnp.where(valid, bce, 0.0),
                   jnp.where(valid, p, 0.0),
                   jnp.where(valid, t, 0.0))


def bce_dice_loss(logits, targets, smooth=1e-6):
    """BCE-with-logits(mean) + 2 * (1 - soft dice) as in the PyTorch module."""
    assert logits.shape == targets.shape
    n = int(logits.size)

    def as_streamable(a):
        if a.dtype in (jnp.float32, jnp.bfloat16, jnp.float16):
            return a
        return a.astype(jnp.float32)

    x_flat = as_streamable(logits).reshape(-1)
    t_flat = as_streamable(targets).reshape(-1)

    # Rows streamed through the kernel: complete groups of 8 full 128-lane rows.
    rows_kernel = (n // LANES) // 8 * 8
    kernel_elems = rows_kernel * LANES
    tail_elems = n - kernel_elems

    # <= 8*128+127 trailing elements handled in plain JAX (no full-array pad copy).
    if tail_elems:
        tail_sums = _partial_sums_jax(x_flat[kernel_elems:], t_flat[kernel_elems:])
    else:
        tail_sums = jnp.zeros((4,), jnp.float32)

    if rows_kernel == 0:
        sums = tail_sums
    else:
        if tail_elems:
            x2 = x_flat[:kernel_elems].reshape(rows_kernel, LANES)
            t2 = t_flat[:kernel_elems].reshape(rows_kernel, LANES)
        else:
            x2 = x_flat.reshape(rows_kernel, LANES)
            t2 = t_flat.reshape(rows_kernel, LANES)

        tile_r = rows_kernel if rows_kernel <= DEFAULT_TILE_ROWS else DEFAULT_TILE_ROWS
        n_blocks = pl.cdiv(rows_kernel, tile_r)

        # Split row-tiles across the two TensorCores of a 2-TC chip (near-zero
        # cost on single-core parts).  Duplicate tiles from a ragged split are
        # clamped in the index_map (no out-of-range DMA) and masked to zero.
        ncores = 2 if n_blocks >= 2 else 1
        tiles_per_core = pl.cdiv(n_blocks, ncores)

        def in_map(c, ti):
            return (jnp.minimum(c * tiles_per_core + ti, n_blocks - 1), 0)

        kernel = functools.partial(
            _bce_dice_partial_kernel,
            rows_valid=rows_kernel,
            tile_r=tile_r,
            tiles_per_core=tiles_per_core,
        )

        in_bytes_per_row = LANES * (x2.dtype.itemsize + t2.dtype.itemsize)
        # 2 buffers per input (double-buffered) + generous headroom, capped well
        # under the v7x scoped-VMEM budget.
        vmem_limit = 2 * tile_r * in_bytes_per_row + (4 << 20)
        vmem_limit = int(max(8 << 20, min(vmem_limit, 30 << 20)))

        parts = pl.pallas_call(
            kernel,
            out_shape=jax.ShapeDtypeStruct((ncores, 32, LANES), jnp.float32),
            grid=(ncores, tiles_per_core),
            in_specs=[
                pl.BlockSpec((tile_r, LANES), in_map),
                pl.BlockSpec((tile_r, LANES), in_map),
            ],
            out_specs=pl.BlockSpec((None, 32, LANES), lambda c, ti: (c, 0, 0)),
            compiler_params=pltpu.CompilerParams(
                dimension_semantics=("parallel", "arbitrary"),
                vmem_limit_bytes=vmem_limit,
            ),
            cost_estimate=pl.CostEstimate(
                flops=12 * n,
                transcendentals=2 * n,
                bytes_accessed=in_bytes_per_row * rows_kernel,
            ),
        )(x2, t2)

        # Tiny epilogue: cross-core + cross-sublane + cross-lane reduction.
        sums = jnp.sum(parts.reshape(ncores, 4, 8, LANES), axis=(0, 2, 3)) + tail_sums

    bce_sum, inter, p_sum, t_sum = sums[0], sums[1], sums[2], sums[3]

    inv_n = 1.0 / float(n)  # exact host-side double; avoids f32(n) rounding
    bce_loss = bce_sum * inv_n
    dice = (2.0 * inter + smooth) / (p_sum + t_sum + smooth)
    return bce_loss + 2.0 * (1.0 - dice)


def _reference(logits, targets, smooth=1e-6):
    """Pure-JAX reference (mirrors the PyTorch module)."""
    x = logits.astype(jnp.float32)
    t = targets.astype(jnp.float32)
    bce = jnp.mean(jnp.maximum(x, 0.0) - x * t + jnp.log1p(jnp.exp(-jnp.abs(x))))
    p = jax.nn.sigmoid(x).reshape(-1)
    tf = t.reshape(-1)
    inter = jnp.sum(p * tf)
    dice = (2.0 * inter + smooth) / (jnp.sum(p) + jnp.sum(tf) + smooth)
    return bce + 2.0 * (1.0 - dice)


if __name__ == "__main__":
    key = jax.random.PRNGKey(0)
    k1, k2 = jax.random.split(key)
    # NCHW, small: batch=2, channels=4, spatial=16
    logits = jax.random.normal(k1, (2, 4, 16, 16), dtype=jnp.float32)
    targets = (jax.random.uniform(k2, (2, 4, 16, 16)) > 0.5).astype(jnp.float32)

    loss = jax.block_until_ready(bce_dice_loss(logits, targets))
    ref = jax.block_until_ready(_reference(logits, targets))
    assert jnp.allclose(loss, ref, atol=1e-4, rtol=1e-4), (loss, ref)

    print("KERNEL_OK")
</pallas_src>

<mosaic_0001>
module attributes {stable_mosaic.version = 11 : i64} {
  func.func @_bce_dice_partial_kernel(%arg0: i32, %arg1: i32, %arg2: memref<16x128xf32, #tpu.memory_space<vmem>>, %arg3: memref<16x128xf32, #tpu.memory_space<vmem>>, %arg4: memref<1x32x128xf32, #tpu.memory_space<vmem>>) attributes {dimension_semantics = [#tpu.dimension_semantics<parallel>, #tpu.dimension_semantics<arbitrary>], iteration_bounds = array<i64: 1, 1>, scalar_prefetch = 0 : i64, scratch_operands = 0 : i64, tpu.core_type = #tpu.core_type<tc>, window_params = [{transform_indices = @transform_0, window_bounds = array<i64: 16, 128>}, {transform_indices = @transform_1, window_bounds = array<i64: 16, 128>}, {transform_indices = @transform_2, window_bounds = array<i64: 1, 32, 128>}]} {
    %c1_i32 = arith.constant 1 : i32
    %0 = arith.muli %arg0, %c1_i32 : i32
    %1 = arith.addi %0, %arg1 : i32
    %c0_i32 = arith.constant 0 : i32
    %2 = arith.cmpi eq, %arg1, %c0_i32 : i32
    %3 = arith.extui %2 : i1 to i32
    %c0_i32_0 = arith.constant 0 : i32
    %4 = arith.cmpi ne, %3, %c0_i32_0 : i32
    scf.if %4 {
      %cst = arith.constant 0.000000e+00 : f32
      %13 = vector.broadcast %cst : f32 to vector<32x128xf32>
      %c0_7 = arith.constant 0 : index
      %c0_8 = arith.constant 0 : index
      %c0_9 = arith.constant 0 : index
      %14 = vector.load %arg4[%c0_7, %c0_8, %c0_9] : memref<1x32x128xf32, #tpu.memory_space<vmem>>, vector<1x32x128xf32>
      %15 = vector.shape_cast %14 : vector<1x32x128xf32> to vector<32x128xf32>
      %16 = vector.shape_cast %13 : vector<32x128xf32> to vector<1x32x128xf32>
      tpu.vector_store %arg4[%c0_7, %c0_8, %c0_9], %16 {strides = array<i32>} : memref<1x32x128xf32, #tpu.memory_space<vmem>>, vector<1x32x128xf32>,
    } else {
    }
    %c0 = arith.constant 0 : index
    %c0_1 = arith.constant 0 : index
    %5 = vector.load %arg2[%c0, %c0_1] : memref<16x128xf32, #tpu.memory_space<vmem>>, vector<16x128xf32>
    %c0_2 = arith.constant 0 : index
    %c0_3 = arith.constant 0 : index
    %6 = vector.load %arg3[%c0_2, %c0_3] : memref<16x128xf32, #tpu.memory_space<vmem>>, vector<16x128xf32>
    %c1_i32_4 = arith.constant 1 : i32
    %7 = arith.cmpi sge, %1, %c1_i32_4 : i32
    %true = arith.constant true
    %8 = arith.xori %7, %true : i1
    %9 = arith.extui %8 : i1 to i32
    %c0_i32_5 = arith.constant 0 : i32
    %10 = arith.cmpi ne, %9, %c0_i32_5 : i32
    scf.if %10 {
      %13 = math.absf %5 : vector<16x128xf32>
      %cst = arith.constant 0.000000e+00 : f32
      %14 = vector.broadcast %cst : f32 to vector<16x128xf32>
      %15 = arith.subf %14, %13 : vector<16x128xf32>
      %16 = math.exp %15 : vector<16x128xf32>
      %cst_7 = arith.constant 0.000000e+00 : f32
      %17 = vector.broadcast %cst_7 : f32 to vector<16x128xf32>
      %18 = arith.maximumf %5, %17 : vector<16x128xf32>
      %19 = arith.mulf %5, %6 : vector<16x128xf32>
      %20 = arith.subf %18, %19 : vector<16x128xf32>
      %21 = math.log1p %16 : vector<16x128xf32>
      %22 = arith.addf %20, %21 : vector<16x128xf32>
      %cst_8 = arith.constant 1.000000e+00 : f32
      %23 = vector.broadcast %cst_8 : f32 to vector<16x128xf32>
      %24 = arith.addf %23, %16 : vector<16x128xf32>
      %cst_9 = arith.constant 1.000000e+00 : f32
      %25 = vector.broadcast %cst_9 : f32 to vector<16x128xf32>
      %26 = arith.divf %25, %24 : vector<16x128xf32>
      %cst_10 = arith.constant 0.000000e+00 : f32
      %27 = vector.broadcast %cst_10 : f32 to vector<16x128xf32>
      %28 = arith.cmpf oge, %5, %27 : vector<16x128xf32>
      %29 = arith.mulf %16, %26 : vector<16x128xf32>
      %30 = arith.select %28, %26, %29 : vector<16x128xi1>, vector<16x128xf32>
      %c0_11 = arith.constant 0 : index
      %c0_12 = arith.constant 0 : index
      %c0_13 = arith.constant 0 : index
      %31 = vector.load %arg4[%c0_11, %c0_12, %c0_13] : memref<1x32x128xf32, #tpu.memory_space<vmem>>, vector<1x8x128xf32>
      %32 = vector.shape_cast %31 : vector<1x8x128xf32> to vector<8x128xf32>
      %33 = vector.shape_cast %22 : vector<16x128xf32> to vector<2x8x128xf32>
      %cst_14 = arith.constant dense<0.000000e+00> : vector<8x128xf32>
      %34 = vector.multi_reduction <add>, %33, %cst_14 [0] : vector<2x8x128xf32> to vector<8x128xf32>
      %35 = arith.addf %32, %34 : vector<8x128xf32>
      %c0_15 = arith.constant 0 : index
      %c0_16 = arith.constant 0 : index
      %c0_17 = arith.constant 0 : index
      %36 = vector.load %arg4[%c0_15, %c0_16, %c0_17] : memref<1x32x128xf32, #tpu.memory_space<vmem>>, vector<1x8x128xf32>
      %37 = vector.shape_cast %36 : vector<1x8x128xf32> to vector<8x128xf32>
      %38 = vector.shape_cast %35 : vector<8x128xf32> to vector<1x8x128xf32>
      tpu.vector_store %arg4[%c0_15, %c0_16, %c0_17], %38 {strides = array<i32>} : memref<1x32x128xf32, #tpu.memory_space<vmem>>, vector<1x8x128xf32>,
      %c0_18 = arith.constant 0 : index
      %c8 = arith.constant 8 : index
      %c0_19 = arith.constant 0 : index
      %39 = vector.load %arg4[%c0_18, %c8, %c0_19] : memref<1x32x128xf32, #tpu.memory_space<vmem>>, vector<1x8x128xf32>
      %40 = vector.shape_cast %39 : vector<1x8x128xf32> to vector<8x128xf32>
      %41 = arith.mulf %30, %6 : vector<16x128xf32>
      %42 = vector.shape_cast %41 : vector<16x128xf32> to vector<2x8x128xf32>
      %cst_20 = arith.constant dense<0.000000e+00> : vector<8x128xf32>
      %43 = vector.multi_reduction <add>, %42, %cst_20 [0] : vector<2x8x128xf32> to vector<8x128xf32>
      %44 = arith.addf %40, %43 : vector<8x128xf32>
      %c0_21 = arith.constant 0 : index
      %c8_22 = arith.constant 8 : index
      %c0_23 = arith.constant 0 : index
      %45 = vector.load %arg4[%c0_21, %c8_22, %c0_23] : memref<1x32x128xf32, #tpu.memory_space<vmem>>, vector<1x8x128xf32>
      %46 = vector.shape_cast %45 : vector<1x8x128xf32> to vector<8x128xf32>
      %47 = vector.shape_cast %44 : vector<8x128xf32> to vector<1x8x128xf32>
      tpu.vector_store %arg4[%c0_21, %c8_22, %c0_23], %47 {strides = array<i32>} : memref<1x32x128xf32, #tpu.memory_space<vmem>>, vector<1x8x128xf32>,
      %c0_24 = arith.constant 0 : index
      %c16 = arith.constant 16 : index
      %c0_25 = arith.constant 0 : index
      %48 = vector.load %arg4[%c0_24, %c16, %c0_25] : memref<1x32x128xf32, #tpu.memory_space<vmem>>, vector<1x8x128xf32>
      %49 = vector.shape_cast %48 : vector<1x8x128xf32> to vector<8x128xf32>
      %50 = vector.shape_cast %30 : vector<16x128xf32> to vector<2x8x128xf32>
      %cst_26 = arith.constant dense<0.000000e+00> : vector<8x128xf32>
      %51 = vector.multi_reduction <add>, %50, %cst_26 [0] : vector<2x8x128xf32> to vector<8x128xf32>
      %52 = arith.addf %49, %51 : vector<8x128xf32>
      %c0_27 = arith.constant 0 : index
      %c16_28 = arith.constant 16 : index
      %c0_29 = arith.constant 0 : index
      %53 = vector.load %arg4[%c0_27, %c16_28, %c0_29] : memref<1x32x128xf32, #tpu.memory_space<vmem>>, vector<1x8x128xf32>
      %54 = vector.shape_cast %53 : vector<1x8x128xf32> to vector<8x128xf32>
      %55 = vector.shape_cast %52 : vector<8x128xf32> to vector<1x8x128xf32>
      tpu.vector_store %arg4[%c0_27, %c16_28, %c0_29], %55 {strides = array<i32>} : memref<1x32x128xf32, #tpu.memory_space<vmem>>, vector<1x8x128xf32>,
      %c0_30 = arith.constant 0 : index
      %c24 = arith.constant 24 : index
      %c0_31 = arith.constant 0 : index
      %56 = vector.load %arg4[%c0_30, %c24, %c0_31] : memref<1x32x128xf32, #tpu.memory_space<vmem>>, vector<1x8x128xf32>
      %57 = vector.shape_cast %56 : vector<1x8x128xf32> to vector<8x128xf32>
      %58 = vector.shape_cast %6 : vector<16x128xf32> to vector<2x8x128xf32>
      %cst_32 = arith.constant dense<0.000000e+00> : vector<8x128xf32>
      %59 = vector.multi_reduction <add>, %58, %cst_32 [0] : vector<2x8x128xf32> to vector<8x128xf32>
      %60 = arith.addf %57, %59 : vector<8x128xf32>
      %c0_33 = arith.constant 0 : index
      %c24_34 = arith.constant 24 : index
      %c0_35 = arith.constant 0 : index
      %61 = vector.load %arg4[%c0_33, %c24_34, %c0_35] : memref<1x32x128xf32, #tpu.memory_space<vmem>>, vector<1x8x128xf32>
      %62 = vector.shape_cast %61 : vector<1x8x128xf32> to vector<8x128xf32>
      %63 = vector.shape_cast %60 : vector<8x128xf32> to vector<1x8x128xf32>
      tpu.vector_store %arg4[%c0_33, %c24_34, %c0_35], %63 {strides = array<i32>} : memref<1x32x128xf32, #tpu.memory_space<vmem>>, vector<1x8x128xf32>,
    } else {
    }
    %11 = arith.extui %7 : i1 to i32
    %c0_i32_6 = arith.constant 0 : i32
    %12 = arith.cmpi ne, %11, %c0_i32_6 : i32
    scf.if %12 {
      %c16_i32 = arith.constant 16 : i32
      %13 = arith.muli %1, %c16_i32 : i32
      %c16_i32_7 = arith.constant 16 : i32
      %14 = arith.subi %c16_i32_7, %13 : i32
      %15 = tpu.iota {dimensions = array<i32: 0>} : vector<16x128xi32>
      %16 = vector.broadcast %14 : i32 to vector<16x128xi32>
      %17 = arith.cmpi slt, %15, %16 : vector<16x128xi32>
      %18 = math.absf %5 : vector<16x128xf32>
      %cst = arith.constant 0.000000e+00 : f32
      %19 = vector.broadcast %cst : f32 to vector<16x128xf32>
      %20 = arith.subf %19, %18 : vector<16x128xf32>
      %21 = math.exp %20 : vector<16x128xf32>
      %cst_8 = arith.constant 0.000000e+00 : f32
      %22 = vector.broadcast %cst_8 : f32 to vector<16x128xf32>
      %23 = arith.maximumf %5, %22 : vector<16x128xf32>
      %24 = arith.mulf %5, %6 : vector<16x128xf32>
      %25 = arith.subf %23, %24 : vector<16x128xf32>
      %26 = math.log1p %21 : vector<16x128xf32>
      %27 = arith.addf %25, %26 : vector<16x128xf32>
      %cst_9 = arith.constant 1.000000e+00 : f32
      %28 = vector.broadcast %cst_9 : f32 to vector<16x128xf32>
      %29 = arith.addf %28, %21 : vector<16x128xf32>
      %cst_10 = arith.constant 1.000000e+00 : f32
      %30 = vector.broadcast %cst_10 : f32 to vector<16x128xf32>
      %31 = arith.divf %30, %29 : vector<16x128xf32>
      %cst_11 = arith.constant 0.000000e+00 : f32
      %32 = vector.broadcast %cst_11 : f32 to vector<16x128xf32>
      %33 = arith.cmpf oge, %5, %32 : vector<16x128xf32>
      %34 = arith.mulf %21, %31 : vector<16x128xf32>
      %35 = arith.select %33, %31, %34 : vector<16x128xi1>, vector<16x128xf32>
      %cst_12 = arith.constant 0.000000e+00 : f32
      %36 = vector.broadcast %cst_12 : f32 to vector<16x128xf32>
      %37 = arith.select %17, %27, %36 : vector<16x128xi1>, vector<16x128xf32>
      %cst_13 = arith.constant 0.000000e+00 : f32
      %38 = vector.broadcast %cst_13 : f32 to vector<16x128xf32>
      %39 = arith.select %17, %35, %38 : vector<16x128xi1>, vector<16x128xf32>
      %cst_14 = arith.constant 0.000000e+00 : f32
      %40 = vector.broadcast %cst_14 : f32 to vector<16x128xf32>
      %41 = arith.select %17, %6, %40 : vector<16x128xi1>, vector<16x128xf32>
      %c0_15 = arith.constant 0 : index
      %c0_16 = arith.constant 0 : index
      %c0_17 = arith.constant 0 : index
      %42 = vector.load %arg4[%c0_15, %c0_16, %c0_17] : memref<1x32x128xf32, #tpu.memory_space<vmem>>, vector<1x8x128xf32>
      %43 = vector.shape_cast %42 : vector<1x8x128xf32> to vector<8x128xf32>
      %44 = vector.shape_cast %37 : vector<16x128xf32> to vector<2x8x128xf32>
      %cst_18 = arith.constant dense<0.000000e+00> : vector<8x128xf32>
      %45 = vector.multi_reduction <add>, %44, %cst_18 [0] : vector<2x8x128xf32> to vector<8x128xf32>
      %46 = arith.addf %43, %45 : vector<8x128xf32>
      %c0_19 = arith.constant 0 : index
      %c0_20 = arith.constant 0 : index
      %c0_21 = arith.constant 0 : index
      %47 = vector.load %arg4[%c0_19, %c0_20, %c0_21] : memref<1x32x128xf32, #tpu.memory_space<vmem>>, vector<1x8x128xf32>
      %48 = vector.shape_cast %47 : vector<1x8x128xf32> to vector<8x128xf32>
      %49 = vector.shape_cast %46 : vector<8x128xf32> to vector<1x8x128xf32>
      tpu.vector_store %arg4[%c0_19, %c0_20, %c0_21], %49 {strides = array<i32>} : memref<1x32x128xf32, #tpu.memory_space<vmem>>, vector<1x8x128xf32>,
      %c0_22 = arith.constant 0 : index
      %c8 = arith.constant 8 : index
      %c0_23 = arith.constant 0 : index
      %50 = vector.load %arg4[%c0_22, %c8, %c0_23] : memref<1x32x128xf32, #tpu.memory_space<vmem>>, vector<1x8x128xf32>
      %51 = vector.shape_cast %50 : vector<1x8x128xf32> to vector<8x128xf32>
      %52 = arith.mulf %39, %41 : vector<16x128xf32>
      %53 = vector.shape_cast %52 : vector<16x128xf32> to vector<2x8x128xf32>
      %cst_24 = arith.constant dense<0.000000e+00> : vector<8x128xf32>
      %54 = vector.multi_reduction <add>, %53, %cst_24 [0] : vector<2x8x128xf32> to vector<8x128xf32>
      %55 = arith.addf %51, %54 : vector<8x128xf32>
      %c0_25 = arith.constant 0 : index
      %c8_26 = arith.constant 8 : index
      %c0_27 = arith.constant 0 : index
      %56 = vector.load %arg4[%c0_25, %c8_26, %c0_27] : memref<1x32x128xf32, #tpu.memory_space<vmem>>, vector<1x8x128xf32>
      %57 = vector.shape_cast %56 : vector<1x8x128xf32> to vector<8x128xf32>
      %58 = vector.shape_cast %55 : vector<8x128xf32> to vector<1x8x128xf32>
      tpu.vector_store %arg4[%c0_25, %c8_26, %c0_27], %58 {strides = array<i32>} : memref<1x32x128xf32, #tpu.memory_space<vmem>>, vector<1x8x128xf32>,
      %c0_28 = arith.constant 0 : index
      %c16 = arith.constant 16 : index
      %c0_29 = arith.constant 0 : index
      %59 = vector.load %arg4[%c0_28, %c16, %c0_29] : memref<1x32x128xf32, #tpu.memory_space<vmem>>, vector<1x8x128xf32>
      %60 = vector.shape_cast %59 : vector<1x8x128xf32> to vector<8x128xf32>
      %61 = vector.shape_cast %39 : vector<16x128xf32> to vector<2x8x128xf32>
      %cst_30 = arith.constant dense<0.000000e+00> : vector<8x128xf32>
      %62 = vector.multi_reduction <add>, %61, %cst_30 [0] : vector<2x8x128xf32> to vector<8x128xf32>
      %63 = arith.addf %60, %62 : vector<8x128xf32>
      %c0_31 = arith.constant 0 : index
      %c16_32 = arith.constant 16 : index
      %c0_33 = arith.constant 0 : index
      %64 = vector.load %arg4[%c0_31, %c16_32, %c0_33] : memref<1x32x128xf32, #tpu.memory_space<vmem>>, vector<1x8x128xf32>
      %65 = vector.shape_cast %64 : vector<1x8x128xf32> to vector<8x128xf32>
      %66 = vector.shape_cast %63 : vector<8x128xf32> to vector<1x8x128xf32>
      tpu.vector_store %arg4[%c0_31, %c16_32, %c0_33], %66 {strides = array<i32>} : memref<1x32x128xf32, #tpu.memory_space<vmem>>, vector<1x8x128xf32>,
      %c0_34 = arith.constant 0 : index
      %c24 = arith.constant 24 : index
      %c0_35 = arith.constant 0 : index
      %67 = vector.load %arg4[%c0_34, %c24, %c0_35] : memref<1x32x128xf32, #tpu.memory_space<vmem>>, vector<1x8x128xf32>
      %68 = vector.shape_cast %67 : vector<1x8x128xf32> to vector<8x128xf32>
      %69 = vector.shape_cast %41 : vector<16x128xf32> to vector<2x8x128xf32>
      %cst_36 = arith.constant dense<0.000000e+00> : vector<8x128xf32>
      %70 = vector.multi_reduction <add>, %69, %cst_36 [0] : vector<2x8x128xf32> to vector<8x128xf32>
      %71 = arith.addf %68, %70 : vector<8x128xf32>
      %c0_37 = arith.constant 0 : index
      %c24_38 = arith.constant 24 : index
      %c0_39 = arith.constant 0 : index
      %72 = vector.load %arg4[%c0_37, %c24_38, %c0_39] : memref<1x32x128xf32, #tpu.memory_space<vmem>>, vector<1x8x128xf32>
      %73 = vector.shape_cast %72 : vector<1x8x128xf32> to vector<8x128xf32>
      %74 = vector.shape_cast %71 : vector<8x128xf32> to vector<1x8x128xf32>
      tpu.vector_store %arg4[%c0_37, %c24_38, %c0_39], %74 {strides = array<i32>} : memref<1x32x128xf32, #tpu.memory_space<vmem>>, vector<1x8x128xf32>,
    } else {
    }
    return
  }
  func.func @transform_0(%arg0: i32, %arg1: i32) -> (i32, i32) {
    %c1_i32 = arith.constant 1 : i32
    %0 = arith.muli %arg0, %c1_i32 : i32
    %1 = arith.addi %0, %arg1 : i32
    %c0_i32 = arith.constant 0 : i32
    %2 = arith.minsi %1, %c0_i32 : i32
    %c0_i32_0 = arith.constant 0 : i32
    %c0_i32_1 = arith.constant 0 : i32
    return %2, %c0_i32_0 : i32, i32
  }
  func.func @transform_1(%arg0: i32, %arg1: i32) -> (i32, i32) {
    %c1_i32 = arith.constant 1 : i32
    %0 = arith.muli %arg0, %c1_i32 : i32
    %1 = arith.addi %0, %arg1 : i32
    %c0_i32 = arith.constant 0 : i32
    %2 = arith.minsi %1, %c0_i32 : i32
    %c0_i32_0 = arith.constant 0 : i32
    %c0_i32_1 = arith.constant 0 : i32
    return %2, %c0_i32_0 : i32, i32
  }
  func.func @transform_2(%arg0: i32, %arg1: i32) -> (i32, i32, i32) {
    %c0_i32 = arith.constant 0 : i32
    %c0_i32_0 = arith.constant 0 : i32
    %c0_i32_1 = arith.constant 0 : i32
    return %arg0, %c0_i32, %c0_i32_0 : i32, i32, i32
  }
}

</mosaic_0001>

<bundles_post_ra>
// kernel: tpu_custom_call.1
= control target key start
LH: loop header
LB: loop body
LE: loop exit
PB: predicated region body
PF: predicated region fallthrough
CT: control target
= control target key end

     0   :  { %7 = vsyncpa [#allocation3], 0  ;;  %s400_s0 = inlined_call_operand.hbm [shape: f32[16,128], index: 0, kind: input, shape index: {}]   ;;  %s401_s1 = inlined_call_operand.hbm [shape: f32[16,128], index: 1, kind: input, shape index: {}]   ;;  %s402_s2 = inlined_call_operand.hbm [shape: f32[1,32,128], index: 2, kind: output, shape index: {}]  }
   0x1   :  { %8 = vsyncpa [#allocation6], 0 }
   0x2   :  { %9 = vsyncpa [#allocation4], 0  ;;  %s335_s9 = smov [#allocation2]   ;;  %s263_s13 = scalar_lea.hbm %s400_s0, 256 }
   0x3   :  { %s21_s10 = sshll.u32 %s335_s9, 4  ;;  %p264_p0 = scmp.ne.s32.totalorder %s400_s0, %s263_s13  ;;  %s22_s10 = int_to_ptr.vmem [resolvable:$true] %s21_s10 }
   0x4   :  { %p267_p1 = scmp.lt.u32.totalorder %s263_s13, %s400_s0 }
   0x6   :  { %p269_p2 = pnand %p267_p1, %p264_p0 }
   0x8   :  { %272 = shalt.err (!%p269_p2)
}
   0x9   :  { %s273_s18 = scalar_lea.vmem %s22_s10, 256  ;;  %p278_p4 = scmp.lt.s32.totalorder %s22_s10, %s22_s10 }
   0xa   :  { %p274_p3 = scmp.ne.s32.totalorder %s22_s10, %s273_s18  ;;  %p279_p5 = scmp.lt.s32.totalorder %s273_s18, %s273_s18 }
   0xc   :  { %p280_p6 = por %p279_p5, %p278_p4 }
   0xe   :  { %p281_p7 = pnand %p280_p6, %p274_p3 }
  0x10   :  { %284 = shalt.err (!%p281_p7)
}
  0x11   :  { %s336_s19 = smov 128   ;;  %s337_s20 = smov 8  }
  0x12   :  { %27 = dma.hbm_to_vmem [thread:$0]  %s400_s0, 256, %s22_s10, [#allocation3], %s336_s19, %s336_s19, %s337_s20  }
  0x13   :  { %s338_s23 = smov [#allocation5]   ;;  %s285_s27 = scalar_lea.hbm %s401_s1, 256 }
  0x14   :  { %s39_s24 = sshll.u32 %s338_s23, 4  ;;  %p286_p8 = scmp.ne.s32.totalorder %s401_s1, %s285_s27  ;;  %s40_s24 = int_to_ptr.vmem [resolvable:$true] %s39_s24 }
  0x15   :  { %p289_p9 = scmp.lt.u32.totalorder %s285_s27, %s401_s1 }
  0x17   :  { %p291_p10 = pnand %p289_p9, %p286_p8 }
  0x19   :  { %294 = shalt.err (!%p291_p10)
}
  0x1a   :  { %s295_s4 = scalar_lea.vmem %s40_s24, 256  ;;  %p300_p12 = scmp.lt.s32.totalorder %s40_s24, %s40_s24 }
  0x1b   :  { %p296_p11 = scmp.ne.s32.totalorder %s40_s24, %s295_s4  ;;  %p301_p13 = scmp.lt.s32.totalorder %s295_s4, %s295_s4 }
  0x1d   :  { %p302_p0 = por %p301_p13, %p300_p12 }
  0x1f   :  { %p303_p1 = pnand %p302_p0, %p296_p11 }
  0x21   :  { %306 = shalt.err (!%p303_p1)
}
  0x22   :  { %45 = dma.hbm_to_vmem [thread:$0]  %s401_s1, 256, %s40_s24, [#allocation6], %s336_s19, %s336_s19, %s337_s20  }
  0x23   :  { %329 = dma.done.wait [#allocation3], 256  }
  0x24   :  { %330 = vsyncadd [#allocation3], 4294967040 }
  0x25   :  { %331 = dma.done.wait [#allocation6], 256  }
  0x26   :  { %332 = vsyncadd [#allocation6], 4294967040  ;;  %v69_v0 = vld [vmem:[#allocation2] sm:$0xff]  ;;  %v70_v1 = vld [vmem:[#allocation2 + $0x8] sm:$0xff]  ;;  %s339_s1 = smov [#allocation7]  }
  0x27   :  { %v78_v2 = vand.u32 2147483647, %v69_v0  ;;  %v79_v3 = vand.u32 2147483647, %v70_v1  ;;  %v71_v4 = vld [vmem:[#allocation5] sm:$0xff]  ;;  %v72_v5 = vld [vmem:[#allocation5 + $0x8] sm:$0xff] }
  0x28   :  { %v139_v8 = vadd.f32 %v72_v5, %v71_v4  ;;  %v86_v18 = vmax.f32 %v69_v0, 0.0  ;;  %v88_v19 = vmul.f32 %v71_v4, %v69_v0  ;;  %v87_v22 = vmax.f32 %v70_v1, 0.0  ;;  %s228_s6 = sshll.u32 %s339_s1, 4  ;;  %s229_s6 = int_to_ptr.vmem [resolvable:$true] %s228_s6 }
  0x29   :  { %v80_v6 = vsub.f32 0.0, %v78_v2  ;;  %v81_v7 = vsub.f32 0.0, %v79_v3  ;;  %v89_v23 = vmul.f32 %v72_v5, %v70_v1  ;;  %vm118_vm2 = vcmp.ge.f32.partialorder %v69_v0, 0.0  ;;  %s307_s7 = scalar_lea.vmem %s229_s6, 512  ;;  %p312_p3 = scmp.lt.s32.totalorder %s229_s6, %s229_s6 }
  0x2a   :  { %141 = vst [vmem:[#allocation7 + $0x18] sm:$0xff] %v139_v8  ;;  %v90_v27 = vsub.f32 %v86_v18, %v88_v19  ;;  %vm119_vm3 = vcmp.ge.f32.partialorder %v70_v1, 0.0  ;;  %p308_p2 = scmp.ne.s32.totalorder %s229_s6, %s307_s7  ;;  %p313_p4 = scmp.lt.s32.totalorder %s307_s7, %s307_s7 }
  0x2b   :  { %v82_v9 = vmul.f32 1.442695, %v80_v6  ;;  %v84_v10 = vmul.f32 1.442695, %v81_v7  ;;  %v91_v30 = vsub.f32 %v87_v22, %v89_v23 }
  0x2c   :  { %p314_p5 = por %p313_p4, %p312_p3 }
  0x2d   :  { %251 = vpow2.f32 %v82_v9 }
  0x2e   :  { %253 = vpow2.f32 %v84_v10  ;;  %p315_p6 = pnand %p314_p5, %p308_p2 }
  0x37   :  { %v252_v11 = vpop.eup %251 }
  0x38   :  { %v254_v12 = vpop.eup %253  ;;  %v92_v13 = vadd.f32 1.0, %v252_v11  ;;  %v95_v15 = vmul.f32 -0.5, %v252_v11  ;;  %v98_v20 = vand.u32 2147483647, %v252_v11 }
  0x39   :  { %v101_v14 = vadd.f32 1.0, %v254_v12  ;;  %v104_v16 = vmul.f32 -0.5, %v254_v12  ;;  %v107_v24 = vand.u32 2147483647, %v254_v12 }
  0x3a   :  { %255 = vlog2.f32 %v92_v13  ;;  %v96_v17 = vadd.f32 1.0, %v95_v15  ;;  %vm99_vm0 = vcmp.lt.f32.partialorder %v98_v20, 0.0004427343 }
  0x3b   :  { %257 = vlog2.f32 %v101_v14  ;;  %v105_v21 = vadd.f32 1.0, %v104_v16  ;;  %vm108_vm1 = vcmp.lt.f32.partialorder %v107_v24, 0.0004427343 }
  0x3c   :  { %259 = vrcp.f32 %v92_v13  ;;  %v97_v25 = vmul.f32 %v252_v11, %v96_v17 }
  0x3d   :  { %261 = vrcp.f32 %v101_v14  ;;  %v106_v28 = vmul.f32 %v254_v12, %v105_v21 }
  0x44   :  { %v256_v26 = vpop.eup %255 }
  0x45   :  { %v258_v29 = vpop.eup %257  ;;  %v94_v31 = vmul.f32 0.6931472, %v256_v26 }
  0x46   :  { %v260_v32 = vpop.eup %259  ;;  %v103_v33 = vmul.f32 0.6931472, %v258_v29 }
  0x47   :  { %v262_v34 = vpop.eup %261  ;;  %v100_v35 = vsel %vm99_vm0, %v97_v25, %v94_v31  ;;  %v120_v36 = vmul.f32 %v260_v32, %v252_v11 }
  0x48   :  { %v109_v37 = vsel %vm108_vm1, %v106_v28, %v103_v33  ;;  %v110_v38 = vadd.f32 %v100_v35, %v90_v27  ;;  %v121_v39 = vmul.f32 %v262_v34, %v254_v12 }
  0x49   :  { %v111_v40 = vadd.f32 %v109_v37, %v91_v30  ;;  %v122_v41 = vsel %vm118_vm2, %v260_v32, %v120_v36 }
  0x4a   :  { %v123_v42 = vsel %vm119_vm3, %v262_v34, %v121_v39  ;;  %v129_v43 = vmul.f32 %v122_v41, %v71_v4 }
  0x4b   :  { %v125_v44 = vadd.f32 %v111_v40, %v110_v38  ;;  %v130_v45 = vmul.f32 %v123_v42, %v72_v5  ;;  %v135_v46 = vadd.f32 %v123_v42, %v122_v41 }
  0x4d   :  { %v131_v47 = vadd.f32 %v130_v45, %v129_v43  ;;  %127 = vst [vmem:[#allocation7] sm:$0xff] %v125_v44  ;;  %137 = vst [vmem:[#allocation7 + $0x10] sm:$0xff] %v135_v46 }
  0x4f   :  { %133 = vst [vmem:[#allocation7 + $0x8] sm:$0xff] %v131_v47 }
  0x50   :  { %318 = shalt.err (!%p315_p6)
}
  0x51   :  { %s319_s10 = scalar_lea.hbm %s402_s2, 512 }
  0x52   :  { %p320_p7 = scmp.ne.s32.totalorder %s402_s2, %s319_s10  ;;  %p323_p8 = scmp.lt.u32.totalorder %s319_s10, %s402_s2 }
  0x54   :  { %p325_p9 = pnand %p323_p8, %p320_p7 }
  0x56   :  { %328 = shalt.err (!%p325_p9)
}
  0x57   :  { %234 = dma.vmem_to_hbm [thread:$0]  %s229_s6, 512, %s402_s2, [#allocation4], %s336_s19, %s336_s19, %s337_s20  }
  0x58   :  { %333 = dma.done.wait [#allocation4], 512  }
  0x59   :  { %334 = vsyncadd [#allocation4], 4294966784 }
  0x5a   :  { %238 = vsyncpa [#allocation3], 1 }
  0x5b   :  { %239 = vsyncpa [#allocation6], 1 }
  0x5c   :  { %240 = vsyncpa [#allocation4], 1 }

</bundles_post_ra>
